<compile_context>
chip_gen: v5e
topology: v5e:2x2
jax: 0.10.0
libtpu: 0.0.40
codegen_flags: <defaults>
</compile_context>

<pallas_src>
import functools

import jax
import jax.numpy as jnp
from jax.experimental import pallas as pl
from jax.experimental.pallas import tpu as pltpu


# ----------------------------------------------------------------------------
# Fused Pallas kernel: all conv layers + all snapshots + aggregation + classifier
# (feature-major / transposed layout: activations are (features, nodes))
# ----------------------------------------------------------------------------
def _make_fused_kernel(num_layers, skip_flags, num_snapshots, aggregation):
    def kernel(*refs):
        a_ref, x_ref = refs[0], refs[1]                               # A_s (N,N) bf16, X^T (f_in,N) f32
        conv_refs = refs[2:2 + 2 * num_layers]                        # (W0^T, b0, W1^T, b1, ...)
        wc1_ref, bc1_ref, wc2_ref, bc2_ref = refs[2 + 2 * num_layers:6 + 2 * num_layers]
        o_ref = refs[6 + 2 * num_layers]
        xw0_sc = refs[7 + 2 * num_layers]                             # (h0, N) bf16 scratch
        acc_sc = refs[8 + 2 * num_layers]                             # (h_last, N) f32 scratch

        s = pl.program_id(0)
        last = pl.num_programs(0) - 1

        @pl.when(s == 0)
        def _init():
            # Layer-0 feature transform is snapshot-independent: compute once, keep in VMEM (bf16,
            # since it is only ever consumed as a propagation-matmul operand).
            xw0 = jnp.dot(conv_refs[0][...], x_ref[...].astype(jnp.bfloat16),
                          preferred_element_type=jnp.float32)
            xw0_sc[...] = xw0.astype(jnp.bfloat16)
            if aggregation == "max":
                acc_sc[...] = jnp.full(acc_sc.shape, -jnp.inf, acc_sc.dtype)
            else:
                acc_sc[...] = jnp.zeros(acc_sc.shape, acc_sc.dtype)

        a_bf = a_ref[...]                       # already bf16 (pre-cast in the wrapper)

        x = x_ref[...]                          # (f_in, N) f32 transposed activations
        for i in range(num_layers):
            w_ref, b_ref = conv_refs[2 * i], conv_refs[2 * i + 1]
            if i == 0:
                xw_bf = xw0_sc[...]
            else:
                xw = jnp.dot(w_ref[...], x.astype(jnp.bfloat16),
                             preferred_element_type=jnp.float32)
                xw_bf = xw.astype(jnp.bfloat16)
            # Propagation: H^T = (W^T X^T) @ A   (A_hat symmetric) -> output lane dim = N (dense).
            h = jnp.dot(xw_bf, a_bf, preferred_element_type=jnp.float32) + b_ref[...]
            if i < num_layers - 1:
                h = jnp.maximum(h, 0.0)
                # TODO(synk): dropout between layers is identity in eval mode (not emitted).
            x = (h + x) if skip_flags[i] else h

        # Snapshot aggregation accumulated in VMEM (no per-snapshot HBM writeback).
        if aggregation == "mean":
            acc_sc[...] = acc_sc[...] + x
        elif aggregation == "max":
            acc_sc[...] = jnp.maximum(acc_sc[...], x)
        else:  # "last"
            acc_sc[...] = x

        @pl.when(s == last)
        def _finalize():
            agg = acc_sc[...]                   # (h_last, N)
            if aggregation == "mean":
                agg = agg * (1.0 / num_snapshots)
            # Classifier MLP over ALL nodes (per-node op, identical to masking first).
            z = jnp.dot(wc1_ref[...], agg.astype(jnp.bfloat16),
                        preferred_element_type=jnp.float32) + bc1_ref[...]   # (d_half, N)
            z = jnp.maximum(z, 0.0)
            # TODO(synk): classifier dropout is identity in eval mode (not emitted).
            logits = jnp.dot(wc2_ref[...], z.astype(jnp.bfloat16),
                             preferred_element_type=jnp.float32) + bc2_ref[0]  # (1, N)
            o_ref[...] = jax.nn.sigmoid(logits).astype(o_ref.dtype)

    return kernel


def _working_set_bytes(n, f_in, dims, d_half):
    """Approximate VMEM working set for the single-block path (bf16 A, double-buffered pipeline)."""
    h0, h_last = dims[1], dims[-1]
    a_block = n * n * 2                                           # bf16 A_s
    x_block = n * f_in * 4
    weights = sum(dims[i] * dims[i + 1] * 2 + dims[i + 1] * 4 for i in range(len(dims) - 1))
    clf = d_half * h_last * 2 + d_half * 4 + d_half * 2 + 4
    scratch = n * h0 * 2 + n * h_last * 4
    out = n * 4
    return 2 * (a_block + x_block + weights + clf + out) + scratch


def gcn_fused_call(a_stack, x, conv_params, clf_params, *, skip_connections, aggregation):
    if aggregation not in ("mean", "max", "last"):
        # TODO(synk): 'weighted' snapshot aggregation (softmax of learnable weights) not implemented.
        raise ValueError(f"unsupported aggregation: {aggregation}")

    s_count, n, _ = a_stack.shape
    f_in = x.shape[1]
    num_layers = len(conv_params)
    dims = [f_in] + [w.shape[1] for (w, _) in conv_params]
    skip_flags = tuple(bool(skip_connections) and dims[i] == dims[i + 1]
                       for i in range(num_layers))
    h0, h_last = dims[1], dims[-1]
    d_half = clf_params["w1"].shape[1]

    # ---- feature-major (transposed) + bf16 operand preparation (wrapper-side, cheap) ----
    a_bf = a_stack.astype(jnp.bfloat16)                       # (S, N, N) bf16; A_hat is symmetric
    x_t = x.T                                                  # (f_in, N) f32 (layer-0 skip operand)
    conv_t = [(w.T.astype(jnp.bfloat16), b.reshape(-1, 1)) for (w, b) in conv_params]
    wc1_t = clf_params["w1"].T.astype(jnp.bfloat16)            # (d_half, h_last) bf16
    bc1_c = clf_params["b1"].reshape(-1, 1)                    # (d_half, 1) f32
    wc2_r = clf_params["w2"].reshape(1, -1).astype(jnp.bfloat16)   # (1, d_half) bf16
    bc2_s = clf_params["b2"].reshape(1,)                       # (1,) f32 scalar -> SMEM

    kernel = _make_fused_kernel(num_layers, skip_flags, s_count, aggregation)

    inputs = [a_bf, x_t]
    in_specs = [
        pl.BlockSpec((None, n, n), lambda s: (s, 0, 0)),       # A_hat for snapshot s (bf16)
        pl.BlockSpec((f_in, n), lambda s: (0, 0)),             # X^T (snapshot-invariant)
    ]
    for (w_t, b_c) in conv_t:
        inputs += [w_t, b_c]
        in_specs += [pl.BlockSpec(w_t.shape, lambda s: (0, 0)),
                     pl.BlockSpec(b_c.shape, lambda s: (0, 0))]
    inputs += [wc1_t, bc1_c, wc2_r, bc2_s]
    in_specs += [pl.BlockSpec(wc1_t.shape, lambda s: (0, 0)),
                 pl.BlockSpec(bc1_c.shape, lambda s: (0, 0)),
                 pl.BlockSpec(wc2_r.shape, lambda s: (0, 0)),
                 pl.BlockSpec(memory_space=pltpu.MemorySpace.SMEM)]   # scalar bc2 in SMEM

    # Advisory cost hint so XLA doesn't treat the fused call as opaque.
    flops = 2 * n * f_in * h0                                  # hoisted X @ W0 (once)
    for i in range(num_layers):
        if i > 0:
            flops += s_count * 2 * n * dims[i] * dims[i + 1]   # H_{i-1} @ W_i
        flops += s_count * 2 * n * n * dims[i + 1]             # A_hat propagation
    flops += 2 * n * h_last * d_half + 2 * n * d_half          # classifier head
    bytes_accessed = (2 * a_bf.size + 4 * x_t.size
                      + sum(2 * w.size + 4 * b.size for (w, b) in conv_t)
                      + 2 * wc1_t.size + 4 * bc1_c.size + 2 * wc2_r.size + 4 + 4 * n)
    cost = pl.CostEstimate(flops=int(flops), transcendentals=int(n),
                           bytes_accessed=int(bytes_accessed))

    # Raise the scoped-VMEM limit only when the working set would exceed the smallest default
    # (16 MiB on v5e); at demo scale this stays None.  Ceiling below physical VMEM on all gens.
    needed = _working_set_bytes(n, f_in, dims, d_half)
    vmem_limit = None
    if needed * 3 // 2 > (16 << 20):
        vmem_limit = min(int(needed * 3 // 2), 100 << 20)

    probs_all = pl.pallas_call(
        kernel,
        out_shape=jax.ShapeDtypeStruct((1, n), jnp.float32),
        grid_spec=pltpu.PrefetchScalarGridSpec(
            num_scalar_prefetch=0,
            grid=(s_count,),                                   # snapshot axis = sequential reduction
            in_specs=in_specs,
            out_specs=pl.BlockSpec((1, n), lambda s: (0, 0)),
            scratch_shapes=[
                pltpu.VMEM((h0, n), jnp.bfloat16),     # hoisted W0^T @ X^T (matmul operand only)
                pltpu.VMEM((h_last, n), jnp.float32),  # snapshot-aggregation accumulator
            ],
        ),
        compiler_params=pltpu.CompilerParams(
            dimension_semantics=("arbitrary",),
            vmem_limit_bytes=vmem_limit),
        cost_estimate=cost,
    )(*inputs)
    return probs_all  # (1, N) lane-dense per-node probabilities


# ----------------------------------------------------------------------------
# Plain-JAX glue (preprocessing + static-shape post gather), jitted end-to-end
# ----------------------------------------------------------------------------
def build_normalized_adjacency(edge_index, num_nodes):
    """Dense D^{-1/2} (A + I) D^{-1/2}, GCNConv-style symmetric normalization."""
    # TODO(synk): duplicate edges collapse to weight 1 (set semantics); PyG would scatter-add.
    src, dst = edge_index
    a = jnp.zeros((num_nodes, num_nodes), jnp.float32)
    a = a.at[dst, src].set(1.0)
    a = a.at[src, dst].set(1.0)                                    # symmetric synthetic graph
    a = jnp.maximum(a, jnp.eye(num_nodes, dtype=jnp.float32))      # self loops
    deg = a.sum(axis=1)
    d_inv_sqrt = 1.0 / jnp.sqrt(deg)
    return d_inv_sqrt[:, None] * a * d_inv_sqrt[None, :]


def init_params(key, node_dim, hidden_dims):
    """Deterministic glorot-ish init matching the module's parameter shapes."""
    params = {"conv": [], "clf": {}}
    dims = [node_dim] + list(hidden_dims)
    for i in range(len(hidden_dims)):
        key, wk = jax.random.split(key)
        fan_in, fan_out = dims[i], dims[i + 1]
        scale = jnp.sqrt(6.0 / (fan_in + fan_out))
        w = jax.random.uniform(wk, (fan_in, fan_out), jnp.float32, -scale, scale)
        b = jnp.zeros((fan_out,), jnp.float32)
        params["conv"].append((w, b))
    d = hidden_dims[-1]
    d_half = d // 2
    key, k1, k2 = jax.random.split(key, 3)
    s1 = jnp.sqrt(6.0 / (d + d_half))
    s2 = jnp.sqrt(6.0 / (d_half + 1))
    params["clf"]["w1"] = jax.random.uniform(k1, (d, d_half), jnp.float32, -s1, s1)
    params["clf"]["b1"] = jnp.zeros((d_half,), jnp.float32)
    params["clf"]["w2"] = jax.random.uniform(k2, (d_half, 1), jnp.float32, -s2, s2)
    params["clf"]["b2"] = jnp.zeros((1,), jnp.float32)
    return params


def gcn_forward(params, node_features, a_stack, post_indices, *,
                skip_connections=True, aggregation="mean"):
    probs_all = gcn_fused_call(
        a_stack, node_features, params["conv"], params["clf"],
        skip_connections=skip_connections, aggregation=aggregation)
    # Static-shape post-node gather (squeeze(-1) is implicit: output is already (1, N)).
    return probs_all[0, post_indices]


# ----------------------------------------------------------------------------
# Demo
# ----------------------------------------------------------------------------
if __name__ == "__main__":
    key = jax.random.PRNGKey(0)

    config = {
        "node_dim": 16,
        "hidden_dims": [32, 32],
        "dropout": 0.1,
        "snapshot_aggregation": "mean",
        "num_snapshots": 3,
        "conv_type": "gcn",
        "skip_connections": True,
    }

    NUM_NODES = 128
    NUM_EDGES = 256
    NUM_POSTS = 8

    key, kx, kparams = jax.random.split(key, 3)
    node_features = jax.random.normal(kx, (NUM_NODES, config["node_dim"]), jnp.float32)

    adjacencies = []
    for _ in range(config["num_snapshots"]):
        key, ks, kd = jax.random.split(key, 3)
        src = jax.random.randint(ks, (NUM_EDGES,), 0, NUM_NODES)
        dst = jax.random.randint(kd, (NUM_EDGES,), 0, NUM_NODES)
        adjacencies.append(build_normalized_adjacency((src, dst), NUM_NODES))
    a_stack = jnp.stack(adjacencies)                       # (S, N, N)

    post_mask = jnp.zeros((NUM_NODES,), bool).at[:NUM_POSTS].set(True)
    post_indices = jnp.nonzero(post_mask, size=NUM_POSTS)[0]   # static-size, jit-friendly

    params = init_params(kparams, config["node_dim"], config["hidden_dims"])

    fwd = jax.jit(functools.partial(
        gcn_forward,
        skip_connections=config["skip_connections"],
        aggregation=config["snapshot_aggregation"]))

    probs = fwd(params, node_features, a_stack, post_indices)
    probs = jax.block_until_ready(probs)

    assert probs.shape == (NUM_POSTS,)
    assert bool(jnp.all(jnp.isfinite(probs)))
    assert bool(jnp.all((probs >= 0.0) & (probs <= 1.0)))
    print("KERNEL_OK")
</pallas_src>

<mosaic_0001>
module attributes {stable_mosaic.version = 11 : i64} {
  func.func @kernel(%arg0: i32, %arg1: memref<1x128x128xbf16, #tpu.memory_space<vmem>>, %arg2: memref<16x128xf32, #tpu.memory_space<vmem>>, %arg3: memref<32x16xbf16, #tpu.memory_space<vmem>>, %arg4: memref<32x1xf32, #tpu.memory_space<vmem>>, %arg5: memref<32x32xbf16, #tpu.memory_space<vmem>>, %arg6: memref<32x1xf32, #tpu.memory_space<vmem>>, %arg7: memref<16x32xbf16, #tpu.memory_space<vmem>>, %arg8: memref<16x1xf32, #tpu.memory_space<vmem>>, %arg9: memref<1x16xbf16, #tpu.memory_space<vmem>>, %arg10: memref<1xf32, #tpu.memory_space<smem>>, %arg11: memref<1x128xf32, #tpu.memory_space<vmem>>, %arg12: memref<32x128xbf16, #tpu.memory_space<vmem>>, %arg13: memref<32x128xf32, #tpu.memory_space<vmem>>) attributes {dimension_semantics = [#tpu.dimension_semantics<arbitrary>], iteration_bounds = array<i64: 3>, scalar_prefetch = 0 : i64, scratch_operands = 2 : i64, tpu.core_type = #tpu.core_type<tc>, window_params = [{transform_indices = @transform_0, window_bounds = array<i64: 1, 128, 128>}, {pipeline_mode = #tpu.pipeline_mode<synchronous>, transform_indices = @transform_1, window_bounds = array<i64: 16, 128>}, {pipeline_mode = #tpu.pipeline_mode<synchronous>, transform_indices = @transform_2, window_bounds = array<i64: 32, 16>}, {pipeline_mode = #tpu.pipeline_mode<synchronous>, transform_indices = @transform_3, window_bounds = array<i64: 32, 1>}, {pipeline_mode = #tpu.pipeline_mode<synchronous>, transform_indices = @transform_4, window_bounds = array<i64: 32, 32>}, {pipeline_mode = #tpu.pipeline_mode<synchronous>, transform_indices = @transform_5, window_bounds = array<i64: 32, 1>}, {pipeline_mode = #tpu.pipeline_mode<synchronous>, transform_indices = @transform_6, window_bounds = array<i64: 16, 32>}, {pipeline_mode = #tpu.pipeline_mode<synchronous>, transform_indices = @transform_7, window_bounds = array<i64: 16, 1>}, {pipeline_mode = #tpu.pipeline_mode<synchronous>, transform_indices = @transform_8, window_bounds = array<i64: 1, 16>}, {transform_indices = @transform_9, window_bounds = array<i64: 1>}, {pipeline_mode = #tpu.pipeline_mode<synchronous>, transform_indices = @transform_10, window_bounds = array<i64: 1, 128>}]} {
    %c0_i32 = arith.constant 0 : i32
    %0 = arith.cmpi eq, %arg0, %c0_i32 : i32
    %1 = arith.extui %0 : i1 to i32
    %c0_i32_0 = arith.constant 0 : i32
    %2 = arith.cmpi ne, %1, %c0_i32_0 : i32
    scf.if %2 {
      %c0_19 = arith.constant 0 : index
      %c0_20 = arith.constant 0 : index
      %27 = vector.load %arg3[%c0_19, %c0_20] : memref<32x16xbf16, #tpu.memory_space<vmem>>, vector<32x16xbf16>
      %c0_21 = arith.constant 0 : index
      %c0_22 = arith.constant 0 : index
      %28 = vector.load %arg2[%c0_21, %c0_22] : memref<16x128xf32, #tpu.memory_space<vmem>>, vector<16x128xf32>
      %29 = arith.truncf %28 : vector<16x128xf32> to vector<16x128xbf16>
      %cst_23 = arith.constant dense<0.000000e+00> : vector<32x128xf32>
      %30 = tpu.matmul %27, %29, %cst_23 {dimension_numbers = #tpu.dot_dimension_numbers<[1], [0], [0], [1], [0, 0, 1, 1], [], []>} : vector<32x16xbf16>, vector<16x128xbf16>, vector<32x128xf32> -> vector<32x128xf32>
      %31 = arith.truncf %30 : vector<32x128xf32> to vector<32x128xbf16>
      %c0_24 = arith.constant 0 : index
      %c0_25 = arith.constant 0 : index
      %32 = vector.load %arg12[%c0_24, %c0_25] : memref<32x128xbf16, #tpu.memory_space<vmem>>, vector<32x128xbf16>
      tpu.vector_store %arg12[%c0_24, %c0_25], %31 {strides = array<i32>} : memref<32x128xbf16, #tpu.memory_space<vmem>>, vector<32x128xbf16>,
      %cst_26 = arith.constant 0.000000e+00 : f32
      %33 = vector.broadcast %cst_26 : f32 to vector<32x128xf32>
      %c0_27 = arith.constant 0 : index
      %c0_28 = arith.constant 0 : index
      %34 = vector.load %arg13[%c0_27, %c0_28] : memref<32x128xf32, #tpu.memory_space<vmem>>, vector<32x128xf32>
      tpu.vector_store %arg13[%c0_27, %c0_28], %33 {strides = array<i32>} : memref<32x128xf32, #tpu.memory_space<vmem>>, vector<32x128xf32>,
    } else {
    }
    %c0 = arith.constant 0 : index
    %c0_1 = arith.constant 0 : index
    %c0_2 = arith.constant 0 : index
    %3 = vector.load %arg1[%c0, %c0_1, %c0_2] : memref<1x128x128xbf16, #tpu.memory_space<vmem>>, vector<1x128x128xbf16>
    %4 = vector.shape_cast %3 : vector<1x128x128xbf16> to vector<128x128xbf16>
    %c0_3 = arith.constant 0 : index
    %c0_4 = arith.constant 0 : index
    %5 = vector.load %arg12[%c0_3, %c0_4] : memref<32x128xbf16, #tpu.memory_space<vmem>>, vector<32x128xbf16>
    %cst = arith.constant dense<0.000000e+00> : vector<32x128xf32>
    %6 = tpu.matmul %5, %4, %cst {dimension_numbers = #tpu.dot_dimension_numbers<[1], [0], [0], [1], [0, 0, 1, 1], [], []>} : vector<32x128xbf16>, vector<128x128xbf16>, vector<32x128xf32> -> vector<32x128xf32>
    %c0_5 = arith.constant 0 : index
    %c0_6 = arith.constant 0 : index
    %7 = vector.load %arg4[%c0_5, %c0_6] : memref<32x1xf32, #tpu.memory_space<vmem>>, vector<32x1xf32>
    %8 = vector.broadcast %7 : vector<32x1xf32> to vector<32x128xf32>
    %9 = arith.addf %6, %8 : vector<32x128xf32>
    %cst_7 = arith.constant 0.000000e+00 : f32
    %10 = vector.broadcast %cst_7 : f32 to vector<32x128xf32>
    %11 = arith.maximumf %9, %10 : vector<32x128xf32>
    %c0_8 = arith.constant 0 : index
    %c0_9 = arith.constant 0 : index
    %12 = vector.load %arg5[%c0_8, %c0_9] : memref<32x32xbf16, #tpu.memory_space<vmem>>, vector<32x32xbf16>
    %13 = arith.truncf %11 : vector<32x128xf32> to vector<32x128xbf16>
    %cst_10 = arith.constant dense<0.000000e+00> : vector<32x128xf32>
    %14 = tpu.matmul %12, %13, %cst_10 {dimension_numbers = #tpu.dot_dimension_numbers<[1], [0], [0], [1], [0, 0, 1, 1], [], []>} : vector<32x32xbf16>, vector<32x128xbf16>, vector<32x128xf32> -> vector<32x128xf32>
    %15 = arith.truncf %14 : vector<32x128xf32> to vector<32x128xbf16>
    %cst_11 = arith.constant dense<0.000000e+00> : vector<32x128xf32>
    %16 = tpu.matmul %15, %4, %cst_11 {dimension_numbers = #tpu.dot_dimension_numbers<[1], [0], [0], [1], [0, 0, 1, 1], [], []>} : vector<32x128xbf16>, vector<128x128xbf16>, vector<32x128xf32> -> vector<32x128xf32>
    %c0_12 = arith.constant 0 : index
    %c0_13 = arith.constant 0 : index
    %17 = vector.load %arg6[%c0_12, %c0_13] : memref<32x1xf32, #tpu.memory_space<vmem>>, vector<32x1xf32>
    %18 = vector.broadcast %17 : vector<32x1xf32> to vector<32x128xf32>
    %19 = arith.addf %16, %18 : vector<32x128xf32>
    %20 = arith.addf %19, %11 : vector<32x128xf32>
    %c0_14 = arith.constant 0 : index
    %c0_15 = arith.constant 0 : index
    %21 = vector.load %arg13[%c0_14, %c0_15] : memref<32x128xf32, #tpu.memory_space<vmem>>, vector<32x128xf32>
    %22 = arith.addf %21, %20 : vector<32x128xf32>
    %c0_16 = arith.constant 0 : index
    %c0_17 = arith.constant 0 : index
    %23 = vector.load %arg13[%c0_16, %c0_17] : memref<32x128xf32, #tpu.memory_space<vmem>>, vector<32x128xf32>
    tpu.vector_store %arg13[%c0_16, %c0_17], %22 {strides = array<i32>} : memref<32x128xf32, #tpu.memory_space<vmem>>, vector<32x128xf32>,
    %c2_i32 = arith.constant 2 : i32
    %24 = arith.cmpi eq, %arg0, %c2_i32 : i32
    %25 = arith.extui %24 : i1 to i32
    %c0_i32_18 = arith.constant 0 : i32
    %26 = arith.cmpi ne, %25, %c0_i32_18 : i32
    scf.if %26 {
      %c0_19 = arith.constant 0 : index
      %c0_20 = arith.constant 0 : index
      %27 = vector.load %arg13[%c0_19, %c0_20] : memref<32x128xf32, #tpu.memory_space<vmem>>, vector<32x128xf32>
      %cst_21 = arith.constant 0.333333343 : f32
      %28 = vector.broadcast %cst_21 : f32 to vector<32x128xf32>
      %29 = arith.mulf %27, %28 : vector<32x128xf32>
      %c0_22 = arith.constant 0 : index
      %c0_23 = arith.constant 0 : index
      %30 = vector.load %arg7[%c0_22, %c0_23] : memref<16x32xbf16, #tpu.memory_space<vmem>>, vector<16x32xbf16>
      %31 = arith.truncf %29 : vector<32x128xf32> to vector<32x128xbf16>
      %cst_24 = arith.constant dense<0.000000e+00> : vector<16x128xf32>
      %32 = tpu.matmul %30, %31, %cst_24 {dimension_numbers = #tpu.dot_dimension_numbers<[1], [0], [0], [1], [0, 0, 1, 1], [], []>} : vector<16x32xbf16>, vector<32x128xbf16>, vector<16x128xf32> -> vector<16x128xf32>
      %c0_25 = arith.constant 0 : index
      %c0_26 = arith.constant 0 : index
      %33 = vector.load %arg8[%c0_25, %c0_26] : memref<16x1xf32, #tpu.memory_space<vmem>>, vector<16x1xf32>
      %34 = vector.broadcast %33 : vector<16x1xf32> to vector<16x128xf32>
      %35 = arith.addf %32, %34 : vector<16x128xf32>
      %cst_27 = arith.constant 0.000000e+00 : f32
      %36 = vector.broadcast %cst_27 : f32 to vector<16x128xf32>
      %37 = arith.maximumf %35, %36 : vector<16x128xf32>
      %c0_28 = arith.constant 0 : index
      %c0_29 = arith.constant 0 : index
      %38 = vector.load %arg9[%c0_28, %c0_29] : memref<1x16xbf16, #tpu.memory_space<vmem>>, vector<1x16xbf16>
      %39 = arith.truncf %37 : vector<16x128xf32> to vector<16x128xbf16>
      %cst_30 = arith.constant dense<0.000000e+00> : vector<1x128xf32>
      %40 = tpu.matmul %38, %39, %cst_30 {dimension_numbers = #tpu.dot_dimension_numbers<[1], [0], [0], [1], [0, 0, 1, 1], [], []>} : vector<1x16xbf16>, vector<16x128xbf16>, vector<1x128xf32> -> vector<1x128xf32>
      %c0_31 = arith.constant 0 : index
      %41 = memref.load %arg10[%c0_31] : memref<1xf32, #tpu.memory_space<smem>>
      %42 = vector.broadcast %41 : f32 to vector<1x128xf32>
      %43 = arith.addf %40, %42 : vector<1x128xf32>
      %44 = arith.negf %43 : vector<1x128xf32>
      %45 = math.exp %44 : vector<1x128xf32>
      %cst_32 = arith.constant 1.000000e+00 : f32
      %46 = vector.broadcast %cst_32 : f32 to vector<1x128xf32>
      %47 = arith.addf %46, %45 : vector<1x128xf32>
      %48 = arith.divf %46, %47 : vector<1x128xf32>
      %c0_33 = arith.constant 0 : index
      %c0_34 = arith.constant 0 : index
      %49 = vector.load %arg11[%c0_33, %c0_34] : memref<1x128xf32, #tpu.memory_space<vmem>>, vector<1x128xf32>
      tpu.vector_store %arg11[%c0_33, %c0_34], %48 {strides = array<i32>} : memref<1x128xf32, #tpu.memory_space<vmem>>, vector<1x128xf32>,
    } else {
    }
    return
  }
  func.func @transform_0(%arg0: i32) -> (i32, i32, i32) {
    %c0_i32 = arith.constant 0 : i32
    %c0_i32_0 = arith.constant 0 : i32
    %c0_i32_1 = arith.constant 0 : i32
    return %arg0, %c0_i32, %c0_i32_0 : i32, i32, i32
  }
  func.func @transform_1(%arg0: i32) -> (i32, i32) {
    %c0_i32 = arith.constant 0 : i32
    %c0_i32_0 = arith.constant 0 : i32
    %c0_i32_1 = arith.constant 0 : i32
    return %c0_i32, %c0_i32_0 : i32, i32
  }
  func.func @transform_2(%arg0: i32) -> (i32, i32) {
    %c0_i32 = arith.constant 0 : i32
    %c0_i32_0 = arith.constant 0 : i32
    %c0_i32_1 = arith.constant 0 : i32
    return %c0_i32, %c0_i32_0 : i32, i32
  }
  func.func @transform_3(%arg0: i32) -> (i32, i32) {
    %c0_i32 = arith.constant 0 : i32
    %c0_i32_0 = arith.constant 0 : i32
    %c0_i32_1 = arith.constant 0 : i32
    return %c0_i32, %c0_i32_0 : i32, i32
  }
  func.func @transform_4(%arg0: i32) -> (i32, i32) {
    %c0_i32 = arith.constant 0 : i32
    %c0_i32_0 = arith.constant 0 : i32
    %c0_i32_1 = arith.constant 0 : i32
    return %c0_i32, %c0_i32_0 : i32, i32
  }
  func.func @transform_5(%arg0: i32) -> (i32, i32) {
    %c0_i32 = arith.constant 0 : i32
    %c0_i32_0 = arith.constant 0 : i32
    %c0_i32_1 = arith.constant 0 : i32
    return %c0_i32, %c0_i32_0 : i32, i32
  }
  func.func @transform_6(%arg0: i32) -> (i32, i32) {
    %c0_i32 = arith.constant 0 : i32
    %c0_i32_0 = arith.constant 0 : i32
    %c0_i32_1 = arith.constant 0 : i32
    return %c0_i32, %c0_i32_0 : i32, i32
  }
  func.func @transform_7(%arg0: i32) -> (i32, i32) {
    %c0_i32 = arith.constant 0 : i32
    %c0_i32_0 = arith.constant 0 : i32
    %c0_i32_1 = arith.constant 0 : i32
    return %c0_i32, %c0_i32_0 : i32, i32
  }
  func.func @transform_8(%arg0: i32) -> (i32, i32) {
    %c0_i32 = arith.constant 0 : i32
    %c0_i32_0 = arith.constant 0 : i32
    %c0_i32_1 = arith.constant 0 : i32
    return %c0_i32, %c0_i32_0 : i32, i32
  }
  func.func @transform_9(%arg0: i32) -> i32 {
    %c0_i32 = arith.constant 0 : i32
    %c0_i32_0 = arith.constant 0 : i32
    return %c0_i32 : i32
  }
  func.func @transform_10(%arg0: i32) -> (i32, i32) {
    %c0_i32 = arith.constant 0 : i32
    %c0_i32_0 = arith.constant 0 : i32
    %c0_i32_1 = arith.constant 0 : i32
    return %c0_i32, %c0_i32_0 : i32, i32
  }
}

</mosaic_0001>

<bundles_post_ra>
// kernel: gcn_forward.1
= control target key start
LH: loop header
LB: loop body
LE: loop exit
PB: predicated region body
PF: predicated region fallthrough
CT: control target
= control target key end

     0   :  { %s966_s15 = smov 0   ;;  %s1068_s0 = inlined_call_operand.vmem [shape: bf16[3,128,128], index: 0, kind: input, shape index: {}]   ;;  %s1069_s1 = inlined_call_operand.vmem [shape: f32[16,128], index: 1, kind: input, shape index: {}]   ;;  %s1070_s2 = inlined_call_operand.vmem [shape: bf16[32,16], index: 2, kind: input, shape index: {}]   ;;  %s1071_s3 = inlined_call_operand.vmem [shape: f32[32,1], index: 3, kind: input, shape index: {}]   ;;  %s1072_s4 = inlined_call_operand.vmem [shape: bf16[32,32], index: 4, kind: input, shape index: {}]   ;;  %s1073_s5 = inlined_call_operand.vmem [shape: f32[32,1], index: 5, kind: input, shape index: {}]   ;;  %s1074_s6 = inlined_call_operand.vmem [shape: bf16[16,32], index: 6, kind: input, shape index: {}]   ;;  %s1075_s7 = inlined_call_operand.vmem [shape: f32[16,1], index: 7, kind: input, shape index: {}]   ;;  %s1076_s8 = inlined_call_operand.vmem [shape: bf16[1,16], index: 8, kind: input, shape index: {}]   ;;  %s1077_s9 = inlined_call_operand.<no memory space> [shape: f32[1], index: 9, kind: input, shape index: {}]   ;;  %s1078_s10 = inlined_call_operand.vmem [shape: f32[1,128], index: 10, kind: output, shape index: {}]  }
   0x1   :  { %15 = sst [smem:[#allocation4]] %s1077_s9 }
   0x2 LB: > { %s972_s16 = sadd.s32 4294967295, %s903_s15   ;;  %p760_p0 = scmp.ge.s32.totalorder %s903_s15, 1  ;;  %s903_s15 = sphi %s966_s15, %s21_s15  }
   0x3   : > { %p308_p1 = scmp.lt.s32.totalorder %s903_s15, 4 }
   0x5   : > { %p309_p2 = pnand %p760_p0, %p308_p1 }
   0x6   : > { %p341_p3 = scmp.lt.s32.totalorder (!%p309_p2), %s972_s16, 2  ;;  %p763_p4 = scmp.ne.s32.totalorder (!%p309_p2), %s972_s16, 0 }
   0x7   : > { %312 = sbr.rel (%p309_p2) target bundleno = 965 (0x3c5), region = 60 }
   0xc   : > { %s342_s9 = scalar_select %p341_p3, %s972_s16, 2 }
   0xd   : > { %350 = sbr.rel (%p763_p4) target bundleno = 162 (0xa2), region = 64 }
   0xe   : > { %s834_s17 = sshll.u32 %s342_s9, 6 }
   0xf   : > { %s981_s20 = scalar_lea.vmem %s1068_s0, %s834_s17 }
  0x12   : > { %v355_v0 = vld [vmem:[%s1069_s1] sm:$0xff]  ;;  %v356_v1 = vld [vmem:[%s1069_s1 + $0x8] sm:$0xff]  ;;  %vm368_vm0 = vcmask 130048   ;;  %v905_v5 = vmov 0.0  }
  0x13   : > { %v357_v2 = vpack.c.bf16 %v356_v1, %v355_v0  ;;  %v835_v3 = vld [vmem:[%s1070_s2] sm:$0xff]  ;;  %v836_v4 = vld [vmem:[%s1070_s2 + $0x8] sm:$0xff]  ;;  %402 = vst [vmem:[#allocation3 + $0x8] sm:$0xff] %v905_v5 }
  0x14   : > { %403 = vst [vmem:[#allocation3 + $0x10] sm:$0xff] %v905_v5 }
  0x15   : > { %382 = vmatpush.bf16.msra.mxu0 %v357_v2  ;;  %861 = vmatpush.bf16.msra.mxu1 %v357_v2  ;;  %404 = vst [vmem:[#allocation3] sm:$0xff] %v905_v5 }
  0x16   : > { %405 = vst [vmem:[#allocation3 + $0x18] sm:$0xff] %v905_v5 }
  0x18   : > { %772 = vmatmul.msk.bf16.vlgmr.msra.gmra.mxu0 %vm368_vm0, %v835_v3  ;;  %773 = vmatmul.msk.bf16.vlgmr.msra.gmra.mxu1 %vm368_vm0, %v836_v4 }
  0x95   : > { %v384_v6 = vpop.f32.mrf.mxu0  ;;  %v389_v7 = vpop.f32.mrf.mxu1 }
  0x9d   : > { %v386_v8 = vpop.f32.mrf.mxu0  ;;  %v391_v9 = vpop.f32.mrf.mxu1 }
  0x9e   : > { %v853_v10 = vpack.c.bf16 %v386_v8, %v384_v6  ;;  %v858_v11 = vpack.c.bf16 %v391_v9, %v389_v7 }
  0xa0   : > { %854 = vst [vmem:[#allocation2] sm:$0xff] %v853_v10  }
  0xa1   : > { %860 = vst [vmem:[#allocation2 + $0x8] sm:$0xff] %v858_v11  }
  0xa2 PF: > { %v997_v12 = vld [vmem:[%s981_s20 + $0x38] sm:$0xff]  ;;  %v906_v13 = vmov 0   ;;  %v1002_v14 = vld [vmem:[%s981_s20 + $0x30] sm:$0xff]  ;;  %v426_v16 = vld [vmem:[%s1071_s3] sm:$0xff]  ;;  %vm549_vm1 = vcmask 261120   ;;  %p824_p5 = scmp.ne.s32.totalorder %s972_s16, 2 }
  0xa3   : > { %889 = vset.pattern.permute.xlu0 %v906_v13  ;;  %890 = vset.pattern.permute.xlu1 %v906_v13  ;;  %v428_v15 = vld [vmem:[%s1071_s3 + $0x10] sm:$0xff]  ;;  %v842_v17 = vld [vmem:[%s981_s20 + $0x28] sm:$0xff]  ;;  %v429_v18 = vld [vmem:[%s1071_s3 + $0x18] sm:$0xff]  ;;  %s690_s18 = sld [smem:[#allocation4]] (!%p824_p5) }
  0xa4   : > { %862 = vmatpush.bf16.msra.mxu3 %v997_v12  ;;  %510 = vmatpush.bf16.msra.mxu0 %v997_v12  ;;  %v427_v19 = vld [vmem:[%s1071_s3 + $0x8] sm:$0xff]  ;;  %v841_v20 = vld [vmem:[%s981_s20 + $0x20] sm:$0xff]  ;;  %v840_v21 = vld [vmem:[%s981_s20 + $0x18] sm:$0xff] }
  0xa5   : > { %870 = vmatpush.bf16.msra.mxu2 %v997_v12  ;;  %891 = vset.pattern.permute.xlu2 %v906_v13  ;;  %v579_v22 = vld [vmem:[%s1073_s5 + $0x10] sm:$0xff]  ;;  %v580_v23 = vld [vmem:[%s1073_s5 + $0x18] sm:$0xff]  ;;  %v838_v25 = vld [vmem:[%s981_s20 + $0x8] sm:$0xff] }
  0xa6   : > { %442 = vperm.xlu0 %889, %v428_v15   ;;  %432 = vperm.xlu1 %890, %v426_v16   ;;  %v839_v24 = vld [vmem:[%s981_s20 + $0x10] sm:$0xff]  ;;  %v837_v26 = vld [vmem:[%s981_s20] sm:$0xff]  ;;  %v848_v48 = vld [vmem:[%s1072_s4 + $0x8] sm:$0xff] }
  0xa7   : > { %v845_v28 = vld [vmem:[#allocation2] sm:$0xff]  ;;  %v578_v51 = vld [vmem:[%s1073_s5 + $0x8] sm:$0xff]  ;;  %v624_v60 = vld [vmem:[#allocation3 + $0x8] sm:$0xff] }
  0xa8   : > { %863 = vmatpush.bf16.msra.mxu3 %v1002_v14  ;;  %511 = vmatpush.bf16.msra.mxu0 %v1002_v14  ;;  %v846_v27 = vld [vmem:[#allocation2 + $0x8] sm:$0xff]  ;;  %v847_v47 = vld [vmem:[%s1072_s4] sm:$0xff]  ;;  %v626_v8 = vld [vmem:[#allocation3] sm:$0xff] }
  0xa9   : > { %871 = vmatpush.bf16.msra.mxu2 %v1002_v14  ;;  %v577_v49 = vld [vmem:[%s1073_s5] sm:$0xff] }
  0xaa   : > { %583 = vperm.xlu2 %891, %v577_v49   ;;  %v625_v2 = vld [vmem:[#allocation3 + $0x10] sm:$0xff] }
  0xac   : > { %864 = vmatpush.bf16.msra.mxu3 %v842_v17  ;;  %512 = vmatpush.bf16.msra.mxu0 %v842_v17 }
  0xad   : > { %872 = vmatpush.bf16.msra.mxu2 %v842_v17 }
  0xae   : > { %447 = vperm.xlu0 %889, %v429_v18   ;;  %437 = vperm.xlu1 %890, %v427_v19  }
  0xb0   : > { %865 = vmatpush.bf16.msra.mxu3 %v841_v20  ;;  %513 = vmatpush.bf16.msra.mxu0 %v841_v20 }
  0xb1   : > { %873 = vmatpush.bf16.msra.mxu2 %v841_v20 }
  0xb2   : > { %588 = vperm.xlu2 %891, %v578_v51  }
  0xb4   : > { %866 = vmatpush.bf16.msra.mxu3 %v840_v21  ;;  %514 = vmatpush.bf16.msra.mxu0 %v840_v21 }
  0xb5   : > { %874 = vmatpush.bf16.msra.mxu2 %v840_v21 }
  0xb6   : > { %593 = vperm.xlu0 %889, %v579_v22   ;;  %598 = vperm.xlu1 %890, %v580_v23  }
  0xb8   : > { %867 = vmatpush.bf16.msra.mxu3 %v839_v24  ;;  %515 = vmatpush.bf16.msra.mxu0 %v839_v24 }
  0xb9   : > { %875 = vmatpush.bf16.msra.mxu2 %v839_v24 }
  0xbc   : > { %868 = vmatpush.bf16.msra.mxu3 %v838_v25  ;;  %516 = vmatpush.bf16.msra.mxu0 %v838_v25 }
  0xbd   : > { %876 = vmatpush.bf16.msra.mxu2 %v838_v25 }
  0xc0   : > { %869 = vmatpush.bf16.msra.mxu3 %v837_v26  ;;  %517 = vmatpush.bf16.msra.mxu0 %v837_v26 }
  0xc1   : > { %877 = vmatpush.bf16.msra.mxu2 %v837_v26 }
  0xc3   : > { %523 = vmatmul.bf16.vlgmr.msra.gmra.mxu3 %v846_v27  ;;  %518 = vmatmul.bf16.vlgmr.msra.gmra.mxu0 %v845_v28 }
 0x104   : > { %v584_v57 = vpop.permute.xlu2 %583 }
 0x10c   : > { %v589_v63 = vpop.permute.xlu2 %588 }
 0x118   : > { %v443_v30 = vpop.permute.xlu0 %442  ;;  %v433_v31 = vpop.permute.xlu1 %432 }
 0x120   : > { %v448_v34 = vpop.permute.xlu0 %447  ;;  %v438_v36 = vpop.permute.xlu1 %437 }
 0x128   : > { %v594_v5 = vpop.permute.xlu0 %593  ;;  %v599_v11 = vpop.permute.xlu1 %598 }
 0x140   : > { %v519_v29 = vpop.f32.mrf.mxu0 }
 0x141   : > { %v520_v38 = vadd.f32 %v519_v29, %v433_v31 }
 0x143   : > { %v529_v43 = vmax.f32 %v520_v38, 0.0 }
 0x146   : > { %v524_v32 = vpop.f32.mrf.mxu3 }
 0x147   : > { %v525_v35 = vadd.f32 %v524_v32, %v443_v30 }
 0x148   : > { %v521_v33 = vpop.f32.mrf.mxu0 }
 0x149   : > { %v522_v39 = vadd.f32 %v521_v33, %v438_v36  ;;  %v531_v41 = vmax.f32 %v525_v35, 0.0 }
 0x14b   : > { %v530_v44 = vmax.f32 %v522_v39, 0.0 }
 0x14d   : > { %v537_v46 = vpack.c.bf16 %v530_v44, %v529_v43 }
 0x14e   : > { %v526_v37 = vpop.f32.mrf.mxu3 }
 0x14f   : > { %v527_v40 = vadd.f32 %v526_v37, %v448_v34 }
 0x151   : > { %v532_v42 = vmax.f32 %v527_v40, 0.0 }
 0x153   : > { %v538_v45 = vpack.c.bf16 %v532_v42, %v531_v41 }
 0x155   : > { %562 = vmatpush.bf16.msra.mxu1 %v538_v45 }
 0x159   : > { %563 = vmatpush.bf16.msra.mxu1 %v537_v46 }
 0x15c   : > { %822 = vmatmul.msk.bf16.vlgmr.msra.gmra.mxu1 %vm549_vm1, %v847_v47 }
 0x15d   : > { %601 = vmatpush.bf16.msrb.mxu1 %v997_v12 }
 0x161   : > { %602 = vmatpush.bf16.msrb.mxu1 %v1002_v14  ;;  %v627_v14 = vld [vmem:[#allocation3 + $0x18] sm:$0xff] }
 0x165   : > { %603 = vmatpush.bf16.msrb.mxu1 %v842_v17 }
 0x169   : > { %604 = vmatpush.bf16.msrb.mxu1 %v841_v20 }
 0x16c   : > { %823 = vmatmul.msk.bf16.gmra.mxu1 %vm549_vm1, %v848_v48 }
 0x16d   : > { %605 = vmatpush.bf16.msrb.mxu1 %v840_v21 }
 0x171   : > { %606 = vmatpush.bf16.msrb.mxu1 %v839_v24 }
 0x175   : > { %607 = vmatpush.bf16.msrb.mxu1 %v838_v25 }
 0x179   : > { %608 = vmatpush.bf16.msrb.mxu1 %v837_v26 }
 0x1d9   : > { %v565_v50 = vpop.f32.mrf.mxu1 }
 0x1e1   : > { %v567_v52 = vpop.f32.mrf.mxu1 }
 0x1e2   : > { %v575_v53 = vpack.c.bf16 %v567_v52, %v565_v50 }
 0x1e4   : > { %609 = vmatmul.bf16.vlgmr.msrb.gmra.mxu1 %v575_v53 }
 0x1e9   : > { %v570_v54 = vpop.f32.mrf.mxu1 }
 0x1f1   : > { %v572_v55 = vpop.f32.mrf.mxu1 }
 0x1f2   : > { %v576_v56 = vpack.c.bf16 %v572_v55, %v570_v54 }
 0x1f4   : > { %614 = vmatmul.bf16.vlgmr.msra.gmra.mxu2 %v576_v56 }
 0x261   : > { %v610_v58 = vpop.f32.mrf.mxu1 }
 0x262   : > { %v611_v59 = vadd.f32 %v610_v58, %v584_v57 }
 0x264   : > { %v620_v61 = vadd.f32 %v611_v59, %v529_v43 }
 0x266   : > { %v628_v62 = vadd.f32 %v624_v60, %v620_v61 }
 0x268   : > { %632 = vst [vmem:[#allocation3 + $0x8] sm:$0xff] %v628_v62 }
 0x269   : > { %v612_v0 = vpop.f32.mrf.mxu1 }
 0x26a   : > { %v613_v1 = vadd.f32 %v612_v0, %v589_v63 }
 0x26c   : > { %v621_v3 = vadd.f32 %v613_v1, %v530_v44 }
 0x26e   : > { %v629_v4 = vadd.f32 %v625_v2, %v621_v3 }
 0x270   : > { %633 = vst [vmem:[#allocation3 + $0x10] sm:$0xff] %v629_v4 }
 0x277   : > { %v615_v6 = vpop.f32.mrf.mxu2 }
 0x278   : > { %v616_v7 = vadd.f32 %v615_v6, %v594_v5 }
 0x27a   : > { %v622_v9 = vadd.f32 %v616_v7, %v531_v41 }
 0x27c   : > { %v630_v10 = vadd.f32 %v626_v8, %v622_v9 }
 0x27e   : > { %634 = vst [vmem:[#allocation3] sm:$0xff] %v630_v10 }
 0x27f   : > { %v617_v12 = vpop.f32.mrf.mxu2 }
 0x280   : > { %v618_v13 = vadd.f32 %v617_v12, %v599_v11 }
 0x282   : > { %v623_v15 = vadd.f32 %v618_v13, %v532_v42  ;;  %639 = sbr.rel (%p824_p5) target bundleno = 965 (0x3c5), region = 68 }
 0x284   : > { %v631_v16 = vadd.f32 %v627_v14, %v623_v15 }
 0x286   : > { %635 = vst [vmem:[#allocation3 + $0x18] sm:$0xff] %v631_v16 }
 0x287   : > { %v642_v17 = vld [vmem:[#allocation3] sm:$0xff]  ;;  %v640_v19 = vld [vmem:[#allocation3 + $0x8] sm:$0xff]  ;;  %v641_v22 = vld [vmem:[#allocation3 + $0x10] sm:$0xff]  ;;  %v907_v23 = vmov 0   ;;  %vm692_vm2 = vcmask 130048   ;;  %v691_v41 = vstv %s690_s18 }
 0x288   : > { %v646_v20 = vmul.f32 0.33333334, %v642_v17  ;;  %892 = vset.pattern.permute.xlu0 %v907_v23  ;;  %v644_v24 = vmul.f32 0.33333334, %v640_v19  ;;  %v645_v25 = vmul.f32 0.33333334, %v641_v22 }
 0x289   : > { %v652_v26 = vld [vmem:[%s1075_s7] sm:$0xff]  ;;  %v653_v30 = vld [vmem:[%s1075_s7 + $0x8] sm:$0xff] }
 0x28a   : > { %656 = vperm.xlu0 %892, %v652_v26   ;;  %v650_v28 = vpack.c.bf16 %v645_v25, %v644_v24  ;;  %v849_v29 = vld [vmem:[%s1074_s6] sm:$0xff] }
 0x28b   : > { %v688_v40 = vld [vmem:[%s1076_s8] sm:$0x1] }
 0x28d   : > { %v643_v18 = vld [vmem:[#allocation3 + $0x18] sm:$0xff] }
 0x28e   : > { %v647_v21 = vmul.f32 0.33333334, %v643_v18 }
 0x290   : > { %v651_v27 = vpack.c.bf16 %v647_v21, %v646_v20 }
 0x292   : > { %678 = vmatpush.bf16.msra.mxu0 %v651_v27  ;;  %661 = vperm.xlu0 %892, %v653_v30  }
 0x296   : > { %679 = vmatpush.bf16.msra.mxu0 %v650_v28 }
 0x299   : > { %829 = vmatmul.msk.bf16.vlgmr.msra.gmra.mxu0 %vm549_vm1, %v849_v29 }
 0x2fc   : > { %v657_v31 = vpop.permute.xlu0 %656 }
 0x304   : > { %v662_v34 = vpop.permute.xlu0 %661 }
 0x316   : > { %v681_v32 = vpop.f32.mrf.mxu0 }
 0x317   : > { %v682_v33 = vadd.f32 %v681_v32, %v657_v31 }
 0x319   : > { %v686_v37 = vmax.f32 %v682_v33, 0.0 }
 0x31e   : > { %v683_v35 = vpop.f32.mrf.mxu0 }
 0x31f   : > { %v684_v36 = vadd.f32 %v683_v35, %v662_v34 }
 0x321   : > { %v687_v38 = vmax.f32 %v684_v36, 0.0 }
 0x323   : > { %v689_v39 = vpack.c.bf16 %v687_v38, %v686_v37 }
 0x325   : > { %703 = vmatpush.bf16.msra.mxu1 %v689_v39 }
 0x328   : > { %830 = vmatmul.msk.bf16.vlgmr.msra.gmra.mxu1 %vm692_vm2, %v688_v40 }
 0x3a5   : > { %v705_v42 = vpop.f32.mrf.mxu1 }
 0x3a6   : > { %v706_v43 = vadd.f32 %v705_v42, %v691_v41 }
 0x3a8   : > { %v831_v44 = vmul.f32 -1.442695, %v706_v43 }
 0x3aa   : > { %893 = vpow2.f32 %v831_v44 }
 0x3ad   : > { %v707_v45 = vpop.f32.mrf.mxu1 }
 0x3b0   : > { %v894_v46 = vpop.eup %893 }
 0x3b1   : > { %v712_v47 = vadd.f32 1.0, %v894_v46 }
 0x3b3   : > { %895 = vrcp.f32 %v712_v47  ;;  %v724_v51 = vand.u32 2147483648, %v712_v47  ;;  %v722_v53 = vand.u32 2147483647, %v712_v47  ;;  %vm718_vm4 = vweird.f32 %v712_v47 }
 0x3b5   : > { %v725_v55 = vor.u32 1.1754944e-38, %v724_v51  ;;  %vm723_vm6 = vcmp.eq.f32.partialorder %v722_v53, 8.507059e+37 }
 0x3b9   : > { %v896_v48 = vpop.eup %895 }
 0x3ba   : > { %v714_v49 = vmul.f32 %v896_v48, %v712_v47  ;;  %vm719_vm3 = vweird.f32 %v896_v48 }
 0x3bb   : > { %vm720_vm5 = vmor %vm718_vm4, %vm719_vm3 }
 0x3bc   : > { %v715_v50 = vsub.f32 1.0, %v714_v49 }
 0x3be   : > { %v716_v52 = vmul.f32 %v896_v48, %v715_v50 }
 0x3c0   : > { %v717_v54 = vadd.f32 %v896_v48, %v716_v52 }
 0x3c2   : > { %v721_v56 = vsel %vm720_vm5, %v896_v48, %v717_v54 }
 0x3c3   : > { %v726_v57 = vsel %vm723_vm6, %v725_v55, %v721_v56 }
 0x3c4   : > { %728 = vst [vmem:[%s1078_s10] sm:$0x1] %v726_v57 }
 0x3c5 PF: > { %s21_s15 = sadd.s32 1, %s903_s15  }
 0x3c6   : > { %p18_p6 = scmp.ge.s32.totalorder %s21_s15, 5  }
 0x3c8   :  { %20 = sbr.rel (!%p18_p6) target bundleno = 2 (0x2), region = 94 }

</bundles_post_ra>
